<compile_context>
chip_gen: v7x
topology: tpu7x:2x2x1
jax: 0.10.0
libtpu: 0.0.40
codegen_flags: <defaults>
</compile_context>

<pallas_src>
import functools

import jax
import jax.numpy as jnp
from jax.experimental import pallas as pl
from jax.experimental.pallas import tpu as pltpu


# ----------------------------------------------------------------------------
# Small helpers
# ----------------------------------------------------------------------------
def _round_up(x, m):
    return ((x + m - 1) // m) * m


def _round_down(x, m):
    return (x // m) * m


def _vmem_limit_bytes():
    """Generation-aware scoped-VMEM budget (v5e/v6e: 128 MiB physical, v7x: 64 MiB)."""
    try:
        cap = getattr(pltpu.get_tpu_info(), "vmem_capacity_bytes", None)
        if cap:
            return int(min(0.70 * cap, 100 * 1024 * 1024))
    except Exception:
        pass
    return 48 * 1024 * 1024  # safe on every generation


def _pad2(a, rows, cols, dtype=None):
    dt = a.dtype if dtype is None else dtype
    out = jnp.zeros((rows, cols), dt)
    return out.at[:a.shape[0], :a.shape[1]].set(a.astype(dt))


# ----------------------------------------------------------------------------
# Pallas kernels
# ----------------------------------------------------------------------------
def _xw_kernel(x_ref, w_ref, dinv_ref, o_ref):
    """o = D^{-1/2} * (X @ W) in bf16 (source-side scaling of the GCN operand)."""
    xw = jnp.dot(x_ref[...].astype(jnp.bfloat16), w_ref[...],
                 preferred_element_type=jnp.float32)
    o_ref[...] = (dinv_ref[...] * xw).astype(jnp.bfloat16)


def _gcn_agg_mid_kernel(sched_ref, counts_ref, adj_ref, xw_ref, dinv_ref,
                        b_ref, w_next_ref, o_ref, acc_ref, *, tk, xw_resident):
    """Non-final GCNConv aggregation fused with the next feature transform.

    acc[i] += A_block(int8 -> bf16) @ XW_s_block      (only for non-zero A blocks)
    epilogue: H = relu(d_i * acc + b);  o = (d_i * (H @ W_next)).bf16
    """
    i = pl.program_id(0)
    k = pl.program_id(1)

    @pl.when(k == 0)
    def _():
        acc_ref[...] = jnp.zeros_like(acc_ref)

    @pl.when(k < counts_ref[i])          # skip padded schedule slots (zero A blocks)
    def _():
        a = adj_ref[...].astype(jnp.bfloat16)
        if xw_resident:
            start = pl.multiple_of(sched_ref[i, k] * tk, tk)
            xw = xw_ref[pl.ds(start, tk), :]
        else:
            xw = xw_ref[...]
        acc_ref[...] += jnp.dot(a, xw, preferred_element_type=jnp.float32)

    @pl.when(k == pl.num_programs(1) - 1)
    def _():
        h = jnp.maximum(dinv_ref[...] * acc_ref[...] + b_ref[...], 0.0)
        nxt = jnp.dot(h.astype(jnp.bfloat16), w_next_ref[...],
                      preferred_element_type=jnp.float32)
        o_ref[...] = (dinv_ref[...] * nxt).astype(jnp.bfloat16)


def _gcn_agg_final_kernel(*refs, num_pred, out_dim, tk, xw_resident):
    """Final GCNConv aggregation fused with the predictor MLP and masked BCE.

    refs = (sched, counts,                                        # scalar prefetch
            adj, xw, dinv, b_gcn, labels, mask, [w_p, b_p]*L,     # inputs
            logits, loss_partials,                                # outputs
            acc)                                                  # scratch
    """
    sched_ref, counts_ref, adj_ref, xw_ref, dinv_ref, bg_ref, y_ref, m_ref = refs[:8]
    pred_refs = refs[8:8 + 2 * num_pred]
    logits_ref, loss_ref, acc_ref = refs[8 + 2 * num_pred:]

    i = pl.program_id(0)
    k = pl.program_id(1)

    @pl.when(k == 0)
    def _():
        acc_ref[...] = jnp.zeros_like(acc_ref)

    @pl.when(k < counts_ref[i])
    def _():
        a = adj_ref[...].astype(jnp.bfloat16)
        if xw_resident:
            start = pl.multiple_of(sched_ref[i, k] * tk, tk)
            xw = xw_ref[pl.ds(start, tk), :]
        else:
            xw = xw_ref[...]
        acc_ref[...] += jnp.dot(a, xw, preferred_element_type=jnp.float32)

    @pl.when(k == pl.num_programs(1) - 1)
    def _():
        # last GCN layer: no ReLU
        h = dinv_ref[...] * acc_ref[...] + bg_ref[...]
        # predictor MLP (ReLU between layers, none after the last)
        for l in range(num_pred):
            w = pred_refs[2 * l][...]
            b = pred_refs[2 * l + 1][...]
            h = jnp.dot(h.astype(jnp.bfloat16), w,
                        preferred_element_type=jnp.float32) + b
            if l < num_pred - 1:
                h = jnp.maximum(h, 0.0)
        logits_ref[...] = h

        # masked BCE-with-logits (numerically stable), reduced in-kernel.
        y = y_ref[...]
        node_m = m_ref[...]                                      # (tm, 1)
        lane = jax.lax.broadcasted_iota(jnp.int32, h.shape, 1)
        class_m = (lane < out_dim).astype(jnp.float32)           # kill padded lanes
        loss = jnp.maximum(h, 0.0) - h * y + jnp.log1p(jnp.exp(-jnp.abs(h)))
        part = jnp.sum(loss * node_m * class_m)
        loss_ref[...] = jnp.full(loss_ref.shape, part, dtype=jnp.float32)


# ----------------------------------------------------------------------------
# pallas_call wrappers
# ----------------------------------------------------------------------------
def _transform(x, w, dinv, tm, vmem_limit):
    n_pad, f_in = x.shape
    f_out = w.shape[1]
    return pl.pallas_call(
        _xw_kernel,
        out_shape=jax.ShapeDtypeStruct((n_pad, f_out), jnp.bfloat16),
        grid_spec=pltpu.PrefetchScalarGridSpec(
            num_scalar_prefetch=0,
            grid=(n_pad // tm,),
            in_specs=[
                pl.BlockSpec((tm, f_in), lambda i: (i, 0)),
                pl.BlockSpec((f_in, f_out), lambda i: (0, 0)),
                pl.BlockSpec((tm, 1), lambda i: (i, 0)),
            ],
            out_specs=pl.BlockSpec((tm, f_out), lambda i: (i, 0)),
        ),
        compiler_params=pltpu.CompilerParams(
            dimension_semantics=("parallel",),
            vmem_limit_bytes=vmem_limit),
    )(x, w, dinv)


def _gcn_aggregate_mid(sched, counts, adj, xw, dinv, b, w_next, tm, tk,
                       max_steps, xw_resident, vmem_limit):
    n_pad = adj.shape[0]
    f_in = xw.shape[1]
    f_next = w_next.shape[1]
    r_tiles = n_pad // tm

    if xw_resident:
        xw_spec = pl.BlockSpec((n_pad, f_in), lambda i, k, s, c: (0, 0))
    else:
        xw_spec = pl.BlockSpec((tk, f_in), lambda i, k, s, c: (s[i, k], 0))

    kern = functools.partial(_gcn_agg_mid_kernel, tk=tk, xw_resident=xw_resident)
    return pl.pallas_call(
        kern,
        out_shape=jax.ShapeDtypeStruct((n_pad, f_next), jnp.bfloat16),
        grid_spec=pltpu.PrefetchScalarGridSpec(
            num_scalar_prefetch=2,
            grid=(r_tiles, max_steps),
            in_specs=[
                pl.BlockSpec((tm, tk), lambda i, k, s, c: (i, s[i, k])),  # int8 A+I
                xw_spec,                                                  # D^-1/2 * XW
                pl.BlockSpec((tm, 1), lambda i, k, s, c: (i, 0)),         # row D^-1/2
                pl.BlockSpec((1, f_in), lambda i, k, s, c: (0, 0)),       # bias
                pl.BlockSpec((f_in, f_next), lambda i, k, s, c: (0, 0)),  # next W
            ],
            out_specs=pl.BlockSpec((tm, f_next), lambda i, k, s, c: (i, 0)),
            scratch_shapes=[pltpu.VMEM((tm, f_in), jnp.float32)],
        ),
        compiler_params=pltpu.CompilerParams(
            dimension_semantics=("parallel", "arbitrary"),
            vmem_limit_bytes=vmem_limit),
    )(sched, counts, adj, xw, dinv, b, w_next)


def _gcn_aggregate_final(sched, counts, adj, xw, dinv, b, labels, mask,
                         pred_ws, pred_bs, out_dim, tm, tk, max_steps,
                         xw_resident, vmem_limit):
    n_pad = adj.shape[0]
    f_in = xw.shape[1]
    out_pad = pred_ws[-1].shape[1]
    num_pred = len(pred_ws)
    r_tiles = n_pad // tm

    if xw_resident:
        xw_spec = pl.BlockSpec((n_pad, f_in), lambda i, k, s, c: (0, 0))
    else:
        xw_spec = pl.BlockSpec((tk, f_in), lambda i, k, s, c: (s[i, k], 0))

    pred_specs, pred_args = [], []
    for w, bb in zip(pred_ws, pred_bs):
        pred_specs.append(pl.BlockSpec(w.shape, lambda i, k, s, c: (0, 0)))
        pred_specs.append(pl.BlockSpec((1, bb.shape[1]), lambda i, k, s, c: (0, 0)))
        pred_args.extend([w, bb])

    kern = functools.partial(_gcn_agg_final_kernel, num_pred=num_pred,
                             out_dim=out_dim, tk=tk, xw_resident=xw_resident)

    return pl.pallas_call(
        kern,
        out_shape=(
            jax.ShapeDtypeStruct((n_pad, out_pad), jnp.float32),       # logits (padded)
            jax.ShapeDtypeStruct((r_tiles, 8, 128), jnp.float32),      # loss partials
        ),
        grid_spec=pltpu.PrefetchScalarGridSpec(
            num_scalar_prefetch=2,
            grid=(r_tiles, max_steps),
            in_specs=[
                pl.BlockSpec((tm, tk), lambda i, k, s, c: (i, s[i, k])),   # int8 A+I
                xw_spec,                                                   # D^-1/2 * XW
                pl.BlockSpec((tm, 1), lambda i, k, s, c: (i, 0)),          # row D^-1/2
                pl.BlockSpec((1, f_in), lambda i, k, s, c: (0, 0)),        # last GCN bias
                pl.BlockSpec((tm, out_pad), lambda i, k, s, c: (i, 0)),    # labels
                pl.BlockSpec((tm, 1), lambda i, k, s, c: (i, 0)),          # train mask
            ] + pred_specs,
            out_specs=(
                pl.BlockSpec((tm, out_pad), lambda i, k, s, c: (i, 0)),
                pl.BlockSpec((1, 8, 128), lambda i, k, s, c: (i, 0, 0)),
            ),
            scratch_shapes=[pltpu.VMEM((tm, f_in), jnp.float32)],
        ),
        compiler_params=pltpu.CompilerParams(
            dimension_semantics=("parallel", "arbitrary"),
            vmem_limit_bytes=vmem_limit),
    )(sched, counts, adj, xw, dinv, b, labels, mask, *pred_args)


# ----------------------------------------------------------------------------
# Graph preprocessing (plain JAX)
# ----------------------------------------------------------------------------
def _build_graph(edge_index, num_nodes, n_pad):
    """(A + I) adjacency stored directly as int8 (no dense f32 transient) and D^{-1/2}."""
    adj = jnp.zeros((n_pad, n_pad), jnp.int8)
    adj = adj.at[edge_index[0], edge_index[1]].add(jnp.int8(1))   # PyG sums duplicates
    diag = jnp.arange(num_nodes)
    adj = adj.at[diag, diag].set(jnp.int8(1))                     # self-loops
    deg = jnp.sum(adj, axis=1, dtype=jnp.int32).astype(jnp.float32)
    dinv = jnp.where(deg > 0.0, jax.lax.rsqrt(deg), 0.0)          # padded nodes -> 0
    return adj, dinv.reshape(-1, 1).astype(jnp.float32)


def _build_schedule(adj, tm, tk):
    """Block-sparse schedule: per row tile, the non-zero (tm, tk) block indices."""
    n_pad = adj.shape[0]
    r_tiles, k_tiles = n_pad // tm, n_pad // tk
    nnz = (adj.reshape(r_tiles, tm, k_tiles, tk) != 0).any(axis=(1, 3))
    counts = nnz.sum(axis=1).astype(jnp.int32)
    order = jnp.argsort(jnp.where(nnz, 0, 1).astype(jnp.int32), axis=1).astype(jnp.int32)
    # pad slots repeat the last valid block index -> consecutive identical block
    # indices mean the pipeline skips the DMA; pl.when skips the MXU work.
    slot = jnp.arange(k_tiles, dtype=jnp.int32)[None, :]
    last = jnp.take_along_axis(order, jnp.maximum(counts - 1, 0)[:, None], axis=1)
    sched = jnp.where(slot < counts[:, None], order, last)
    try:
        max_steps = max(int(jax.device_get(jnp.max(counts))), 1)
        sched = sched[:, :max_steps]
    except Exception:
        # called under jit (traced edge_index): keep the dense K grid; zero blocks
        # are still skipped per-step via the clamped schedule + pl.when guard.
        max_steps = k_tiles
    return sched, counts, max_steps


# ----------------------------------------------------------------------------
# Forward pass matching GCNClient.forward (eval-mode dropout)
# ----------------------------------------------------------------------------
def gcn_client_forward(params, x, edge_index, train_mask, target_labels, *,
                       row_block=512, k_block=1024, feature_pad=128,
                       xw_resident_bytes=4 * 1024 * 1024):
    """Returns (logits, loss).

    row_block/k_block: (rows, neighbor-K) aggregation tiles (k a multiple of tm;
    keep row_block <= 512 so the final-kernel MLP epilogue stays vreg-friendly).
    feature_pad: lane padding of feature dims (128; use 256 on v6e/v7x for
    full-width MXU on the transform/MLP dots).  Best called eagerly so the
    block-sparse schedule can shrink the K grid; under jit it falls back to a
    dense K grid that still skips zero adjacency blocks per step.
    """
    # TODO(synk): dropout is identity here (eval semantics); training-mode dropout
    # would need pltpu.prng_seed / pltpu.prng_random_bits inside the kernels.
    num_nodes, in_dim = x.shape
    out_dim = target_labels.shape[1]
    vmem_limit = _vmem_limit_bytes()

    gcn_ws, gcn_bs = params["gcn_w"], params["gcn_b"]
    pred_ws, pred_bs = params["pred_w"], params["pred_b"]

    # ---- tile sizes ----
    n_lane = _round_up(num_nodes, 128)
    # keep >= 2 row tiles when possible so "parallel" rows feed both TCs (v7x)
    max_tm = n_lane if n_lane < 256 else max(128, _round_down(n_lane // 2, 128))
    tm = max(128, min(_round_down(row_block, 128), max_tm))
    tk = max(tm, _round_down(min(k_block, n_lane), tm))     # tk a multiple of tm
    n_pad = _round_up(num_nodes, tk)

    fpad = lambda d: _round_up(d, feature_pad)

    # zero-padded / bf16-cast parameters (zero padding keeps the math exact)
    gcn_wp = [_pad2(w, fpad(w.shape[0]), fpad(w.shape[1]),
                    jnp.float32).astype(jnp.bfloat16) for w in gcn_ws]
    gcn_bp = [_pad2(b.reshape(1, -1), 1, fpad(b.shape[0]), jnp.float32)
              for b in gcn_bs]
    pred_wp = [_pad2(w, fpad(w.shape[0]), fpad(w.shape[1]),
                     jnp.float32).astype(jnp.bfloat16) for w in pred_ws]
    pred_bp = [_pad2(b.reshape(1, -1), 1, fpad(b.shape[0]), jnp.float32)
               for b in pred_bs]

    x_p = _pad2(x, n_pad, fpad(in_dim), jnp.float32).astype(jnp.bfloat16)
    adj, dinv = _build_graph(edge_index, num_nodes, n_pad)
    labels_p = _pad2(target_labels.astype(jnp.float32), n_pad, fpad(out_dim))
    mask_col = _pad2(train_mask.astype(jnp.float32).reshape(-1, 1), n_pad, 1)

    sched, counts, max_steps = _build_schedule(adj, tm, tk)
    resident = lambda f: 2 * n_pad * f * 2 <= xw_resident_bytes  # double-buffered bf16

    # ---- GCNEmbedding: feature transform once, then block-sparse aggregations ----
    xw = _transform(x_p, gcn_wp[0], dinv, tm, vmem_limit)
    num_gcn = len(gcn_ws)
    for l in range(num_gcn - 1):
        xw = _gcn_aggregate_mid(sched, counts, adj, xw, dinv, gcn_bp[l],
                                gcn_wp[l + 1], tm, tk, max_steps,
                                resident(xw.shape[1]), vmem_limit)

    # ---- last GCN layer + Predictor MLP + masked BCE, all in one kernel ----
    logits_pad, loss_parts = _gcn_aggregate_final(
        sched, counts, adj, xw, dinv, gcn_bp[-1], labels_p, mask_col,
        pred_wp, pred_bp, out_dim, tm, tk, max_steps,
        resident(xw.shape[1]), vmem_limit)

    logits = logits_pad[:num_nodes, :out_dim]
    mask_f = train_mask.astype(jnp.float32)
    denom = jnp.maximum(mask_f.sum() * out_dim, 1.0)
    loss = loss_parts[:, 0, 0].sum() / denom
    return logits, loss


# ----------------------------------------------------------------------------
# Parameter init (weights stored (in, out) for x @ W) and pure-JAX f32 reference
# ----------------------------------------------------------------------------
def init_params(key, in_dim, gnn_hidden_dim, gnn_out_dim, pred_hidden_dim,
                out_dim, gnn_layers=2, pred_layers=2):
    params = {"gcn_w": [], "gcn_b": [], "pred_w": [], "pred_b": []}

    gcn_dims = [in_dim] + [gnn_hidden_dim] * (gnn_layers - 1) + [gnn_out_dim]
    for i in range(gnn_layers):
        key, kw = jax.random.split(key)
        fan_in, fan_out = gcn_dims[i], gcn_dims[i + 1]
        scale = jnp.sqrt(2.0 / (fan_in + fan_out))
        params["gcn_w"].append(jax.random.normal(kw, (fan_in, fan_out), jnp.float32) * scale)
        params["gcn_b"].append(jnp.zeros((fan_out,), jnp.float32))

    pred_dims = [gnn_out_dim] + [pred_hidden_dim] * (pred_layers - 1) + [out_dim]
    for i in range(pred_layers):
        key, kw = jax.random.split(key)
        fan_in, fan_out = pred_dims[i], pred_dims[i + 1]
        scale = jnp.sqrt(2.0 / (fan_in + fan_out))
        params["pred_w"].append(jax.random.normal(kw, (fan_in, fan_out), jnp.float32) * scale)
        params["pred_b"].append(jnp.zeros((fan_out,), jnp.float32))

    return params


def _reference_forward(params, x, edge_index, train_mask, labels):
    n = x.shape[0]
    adj = jnp.zeros((n, n), jnp.float32).at[edge_index[0], edge_index[1]].add(1.0)
    adj = adj.at[jnp.arange(n), jnp.arange(n)].set(1.0)
    deg = adj.sum(axis=1)
    dinv = jnp.where(deg > 0, 1.0 / jnp.sqrt(deg), 0.0)
    a_hat = dinv[:, None] * adj * dinv[None, :]

    h = x
    ng = len(params["gcn_w"])
    for i, (w, b) in enumerate(zip(params["gcn_w"], params["gcn_b"])):
        h = a_hat @ (h @ w) + b
        if i < ng - 1:
            h = jnp.maximum(h, 0.0)
    np_ = len(params["pred_w"])
    for i, (w, b) in enumerate(zip(params["pred_w"], params["pred_b"])):
        h = h @ w + b
        if i < np_ - 1:
            h = jnp.maximum(h, 0.0)
    logits = h
    mf = train_mask.astype(jnp.float32)[:, None]
    per = jnp.maximum(logits, 0.0) - logits * labels + jnp.log1p(jnp.exp(-jnp.abs(logits)))
    loss = (per * mf).sum() / jnp.maximum(mf.sum() * logits.shape[1], 1.0)
    return logits, loss


if __name__ == "__main__":
    # Deterministic synthetic graph: bidirectional chain + short-range chords
    # (|src-dst| < 40).  With 128-wide tiles the (0,2)/(2,0) adjacency blocks are
    # all-zero, so the block-sparse schedule (skipped K steps) is actually exercised,
    # and the 3x3 tile grid exercises the multi-step row/K pipeline.
    N = 300
    IN_DIM = 12
    GNN_HIDDEN = 64
    GNN_OUT = 32
    PRED_HIDDEN = 64
    OUT_DIM = 6

    key = jax.random.PRNGKey(0)
    key, kx, ke, km, kl = jax.random.split(key, 5)

    x = jax.random.normal(kx, (N, IN_DIM), jnp.float32)

    src_chain = jnp.arange(N - 1)
    dst_chain = jnp.arange(1, N)
    rnd_src = jax.random.randint(ke, (64,), 0, N - 40)
    rnd_dst = rnd_src + jax.random.randint(km, (64,), 1, 40)
    src = jnp.concatenate([src_chain, dst_chain, rnd_src, rnd_dst])
    dst = jnp.concatenate([dst_chain, src_chain, rnd_dst, rnd_src])
    edge_index = jnp.stack([src, dst], axis=0)

    train_mask = (jnp.arange(N) % 2 == 0)
    target_labels = (jax.random.uniform(kl, (N, OUT_DIM)) > 0.5).astype(jnp.float32)

    params = init_params(jax.random.PRNGKey(0), IN_DIM, GNN_HIDDEN, GNN_OUT,
                         PRED_HIDDEN, OUT_DIM, gnn_layers=2, pred_layers=2)

    # Called eagerly (pallas_calls compile individually) so the block-sparse K
    # schedule can shrink the grid to the true max non-zero-block count.
    logits, loss = gcn_client_forward(params, x, edge_index, train_mask,
                                      target_labels, row_block=128, k_block=128)
    jax.block_until_ready((logits, loss))

    # Validate against a pure-JAX f32 reference (bf16 matmuls -> loose tolerance).
    ref_logits, ref_loss = _reference_forward(params, x, edge_index, train_mask,
                                              target_labels)
    assert logits.shape == (N, OUT_DIM)
    assert loss.shape == ()
    assert bool(jnp.isfinite(loss)), "loss is not finite"
    assert bool(jnp.allclose(logits, ref_logits, atol=1e-1, rtol=1e-1)), \
        "logits mismatch vs f32 reference"
    assert bool(jnp.allclose(loss, ref_loss, atol=5e-2, rtol=5e-2)), \
        "loss mismatch vs f32 reference"
    print("KERNEL_OK")
</pallas_src>

<mosaic_0001>
module attributes {stable_mosaic.version = 11 : i64} {
  func.func @_xw_kernel(%arg0: i32, %arg1: memref<128x128xbf16, #tpu.memory_space<vmem>>, %arg2: memref<128x128xbf16, #tpu.memory_space<vmem>>, %arg3: memref<128x1xf32, #tpu.memory_space<vmem>>, %arg4: memref<128x128xbf16, #tpu.memory_space<vmem>>) attributes {dimension_semantics = [#tpu.dimension_semantics<parallel>], iteration_bounds = array<i64: 3>, scalar_prefetch = 0 : i64, scratch_operands = 0 : i64, tpu.core_type = #tpu.core_type<tc>, window_params = [{transform_indices = @transform_0, window_bounds = array<i64: 128, 128>}, {pipeline_mode = #tpu.pipeline_mode<synchronous>, transform_indices = @transform_1, window_bounds = array<i64: 128, 128>}, {transform_indices = @transform_2, window_bounds = array<i64: 128, 1>}, {transform_indices = @transform_3, window_bounds = array<i64: 128, 128>}]} {
    %c0 = arith.constant 0 : index
    %c0_0 = arith.constant 0 : index
    %0 = vector.load %arg1[%c0, %c0_0] : memref<128x128xbf16, #tpu.memory_space<vmem>>, vector<128x128xbf16>
    %c0_1 = arith.constant 0 : index
    %c0_2 = arith.constant 0 : index
    %1 = vector.load %arg2[%c0_1, %c0_2] : memref<128x128xbf16, #tpu.memory_space<vmem>>, vector<128x128xbf16>
    %cst = arith.constant dense<0.000000e+00> : vector<128x128xf32>
    %2 = tpu.matmul %0, %1, %cst {dimension_numbers = #tpu.dot_dimension_numbers<[1], [0], [0], [1], [0, 0, 1, 1], [], []>} : vector<128x128xbf16>, vector<128x128xbf16>, vector<128x128xf32> -> vector<128x128xf32>
    %c0_3 = arith.constant 0 : index
    %c0_4 = arith.constant 0 : index
    %3 = vector.load %arg3[%c0_3, %c0_4] : memref<128x1xf32, #tpu.memory_space<vmem>>, vector<128x1xf32>
    %4 = vector.broadcast %3 : vector<128x1xf32> to vector<128x128xf32>
    %5 = arith.mulf %4, %2 : vector<128x128xf32>
    %6 = arith.truncf %5 : vector<128x128xf32> to vector<128x128xbf16>
    %c0_5 = arith.constant 0 : index
    %c0_6 = arith.constant 0 : index
    %7 = vector.load %arg4[%c0_5, %c0_6] : memref<128x128xbf16, #tpu.memory_space<vmem>>, vector<128x128xbf16>
    tpu.vector_store %arg4[%c0_5, %c0_6], %6 {strides = array<i32>} : memref<128x128xbf16, #tpu.memory_space<vmem>>, vector<128x128xbf16>,
    return
  }
  func.func @transform_0(%arg0: i32) -> (i32, i32) {
    %c0_i32 = arith.constant 0 : i32
    %c0_i32_0 = arith.constant 0 : i32
    return %arg0, %c0_i32 : i32, i32
  }
  func.func @transform_1(%arg0: i32) -> (i32, i32) {
    %c0_i32 = arith.constant 0 : i32
    %c0_i32_0 = arith.constant 0 : i32
    %c0_i32_1 = arith.constant 0 : i32
    return %c0_i32, %c0_i32_0 : i32, i32
  }
  func.func @transform_2(%arg0: i32) -> (i32, i32) {
    %c0_i32 = arith.constant 0 : i32
    %c0_i32_0 = arith.constant 0 : i32
    return %arg0, %c0_i32 : i32, i32
  }
  func.func @transform_3(%arg0: i32) -> (i32, i32) {
    %c0_i32 = arith.constant 0 : i32
    %c0_i32_0 = arith.constant 0 : i32
    return %arg0, %c0_i32 : i32, i32
  }
}

</mosaic_0001>

<bundles_post_ra>
// kernel: tpu_custom_call.1
= control target key start
LH: loop header
LB: loop body
LE: loop exit
PB: predicated region body
PF: predicated region fallthrough
CT: control target
= control target key end

     0   :  { %8 = vsyncpa [#allocation3], 0  ;;  %s1194_s0 = inlined_call_operand.vmem [shape: bf16[384,128], index: 0, kind: input, shape index: {}]   ;;  %s1195_s1 = inlined_call_operand.vmem [shape: bf16[128,128], index: 1, kind: input, shape index: {}]   ;;  %s1196_s2 = inlined_call_operand.vmem [shape: f32[384,1], index: 2, kind: input, shape index: {}]   ;;  %s1197_s3 = inlined_call_operand.hbm [shape: bf16[384,128], index: 3, kind: output, shape index: {}]  }
   0x1   :  { %10 = vsyncpa [#allocation3 + $0x1], 0  ;;  %s1022_s12 = smov 0   ;;  %s1024_s13 = smov 0  }
   0x2   :  { %s1026_s14 = smov 0   ;;  %s1028_s15 = smov 0  }
   0x3 LB: > { %s1043_s16 = sadd.s32 4294967295, %s996_s15   ;;  %s700_s17 = sadd.s32 4294967294, %s996_s15   ;;  %s996_s15 = sphi %s1028_s15, %s1203_s15   ;;  %s992_s14 = sphi %s1026_s14, %s1202_s14   ;;  %s988_s13 = sphi %s1024_s13, %s1201_s13   ;;  %s984_s12 = sphi %s1022_s12, %s1200_s12  }
   0x4   : > { %s1047_s18 = sadd.s32 1, %s996_s15   ;;  %s96_s19 = sadd.s32 1, %s992_s14 }
   0x5   : > { %s93_s20 = ssub.s32 %s996_s15, %s1047_s18  ;;  %p106_p0 = scmp.ne.s32.totalorder %s992_s14, %s988_s13 }
   0x6   : > { %p94_p1 = scmp.eq.s32.totalorder %s93_s20, 0  ;;  %p107_p2 = scmp.eq.s32.totalorder %s1043_s16, 2 }
   0x7   : > { %p112_p3 = scmp.ne.s32.totalorder %s988_s13, %s984_s12  ;;  %p113_p4 = scmp.eq.s32.totalorder %s700_s17, 2 }
   0x8   : > { %s1058_s21 = scalar_select %p94_p1, %s992_s14, %s96_s19  }
   0x9   : > { %p1060_p5 = por %p107_p2, %p106_p0  ;;  %p1064_p6 = por %p113_p4, %p112_p3 }
   0xa   : > { %p703_p7 = scmp.ge.s32.totalorder %s996_s15, 1  ;;  %p152_p8 = scmp.lt.s32.totalorder %s996_s15, 4 }
   0xc   : > { %p153_p9 = pnand %p703_p7, %p152_p8 }
   0xd   : > { %v918_v0 = vld [vmem:[%s1195_s1] sm:$0xff] (!%p153_p9)   ;;  %s705_s26 = sshll.u32 (!%p153_p9), %s1043_s16, 4  ;;  %v919_v1 = vld [vmem:[%s1195_s1 + $0x8] sm:$0xff] (!%p153_p9)   ;;  %v920_v2 = vld [vmem:[%s1195_s1 + $0x10] sm:$0xff] (!%p153_p9)   ;;  %v998_v3 = vmov (!%p153_p9), 0   ;;  %s999_s19 = smov (!%p153_p9), [#allocation2]  }
   0xe   : > { %156 = sbr.rel (%p153_p9) target bundleno = 288 (0x120), region = 32  ;;  %p182_p10 = scmp.lt.s32.totalorder (!%p153_p9), %s705_s26, 47  ;;  %826 = vmatprep.subr.bf16.mxu0 (!%p153_p9), %v918_v0  ;;  %858 = vmatprep.subr.bf16.mxu1 (!%p153_p9), %v918_v0  ;;  %v921_v4 = vld [vmem:[%s1195_s1 + $0x18] sm:$0xff] (!%p153_p9)   ;;  %v922_v7 = vld [vmem:[%s1195_s1 + $0x20] sm:$0xff] (!%p153_p9)   ;;  %v923_v8 = vld [vmem:[%s1195_s1 + $0x28] sm:$0xff] (!%p153_p9)  }
   0xf   : > { %827 = vmatpush3.bf16.msra.mxu0 (!%p153_p9), %v918_v0  ;;  %866 = vmatpush3.bf16.msra.mxu1 (!%p153_p9), %v918_v0  ;;  %v924_v13 = vld [vmem:[%s1195_s1 + $0x30] sm:$0xff] (!%p153_p9)   ;;  %v925_v16 = vld [vmem:[%s1195_s1 + $0x38] sm:$0xff] (!%p153_p9)   ;;  %s938_s20 = sshll.u32 (!%p153_p9), %s999_s19, 4  ;;  %s939_s20 = int_to_ptr.vmem [resolvable:$false] %s938_s20 }
  0x10   : > { %828 = vmatprep.subr.bf16.mxu0 (!%p153_p9), %v919_v1  ;;  %859 = vmatprep.subr.bf16.mxu1 (!%p153_p9), %v919_v1 }
  0x11   : > { %917 = vset.pattern.permute.xlu1 (!%p153_p9), %v998_v3  ;;  %916 = vset.pattern.permute.xlu0 (!%p153_p9), %v998_v3 }
  0x13   : > { %829 = vmatpush3.bf16.msra.mxu0 (!%p153_p9), %v919_v1  ;;  %867 = vmatpush3.bf16.msra.mxu1 (!%p153_p9), %v919_v1 }
  0x14   : > { %830 = vmatprep.subr.bf16.mxu0 (!%p153_p9), %v920_v2  ;;  %860 = vmatprep.subr.bf16.mxu1 (!%p153_p9), %v920_v2 }
  0x15   : > { %s1205_s26 = smov (!%p182_p10, %s705_s26), 47 }
  0x16   : > { %s706_s4 = sshll.u32 %s1205_s26, 2  ;;  %s708_s10 = sshll.u32 %s1205_s26, 3 }
  0x17   : > { %s1083_s7 = scalar_lea.vmem %s1194_s0, %s706_s4  ;;  %831 = vmatpush3.bf16.msra.mxu0 %v920_v2  ;;  %868 = vmatpush3.bf16.msra.mxu1 %v920_v2  ;;  %s1096_s24 = scalar_lea.vmem %s1196_s2, %s708_s10 }
  0x18   : > { %v926_v5 = vld [vmem:[%s1083_s7] sm:$0xff]   ;;  %832 = vmatprep.subr.bf16.mxu0 %v921_v4  ;;  %861 = vmatprep.subr.bf16.mxu1 %v921_v4  ;;  %v422_v9 = vld [vmem:[%s1096_s24 + $0x10] sm:$0xff]  ;;  %v423_v11 = vld [vmem:[%s1096_s24 + $0x18] sm:$0xff]  ;;  %s178_s4 = sand.u32 1, %s988_s13  }
  0x19   : > { %v927_v6 = vld [vmem:[%s1083_s7 + $0x20] sm:$0xff]   ;;  %842 = vmatprep.mubr.bf16.mxu0 %v926_v5  ;;  %448 = vperm.xlu1 %917, %v422_v9   ;;  %v421_v12 = vld [vmem:[%s1096_s24 + $0x8] sm:$0xff]  ;;  %v427_v17 = vld [vmem:[%s1096_s24 + $0x38] sm:$0xff]  ;;  %s704_s5 = sshll.u32 %s178_s4, 6  ;;  %s1153_s11 = scalar_lea.sflag [#allocation3], %s178_s4 }
  0x1a   : > { %850 = vmatprep.mubr.bf16.mxu1 %v927_v6  ;;  %v420_v10 = vld [vmem:[%s1096_s24] sm:$0xff]  ;;  %v425_v14 = vld [vmem:[%s1096_s24 + $0x28] sm:$0xff]  ;;  %v426_v18 = vld [vmem:[%s1096_s24 + $0x30] sm:$0xff]  ;;  %s1132_s6 = scalar_lea.vmem [#allocation2], %s704_s5 }
  0x1b   : > { %833 = vmatpush3.bf16.msra.mxu0 %v921_v4  ;;  %869 = vmatpush3.bf16.msra.mxu1 %v921_v4  ;;  %v424_v15 = vld [vmem:[%s1096_s24 + $0x20] sm:$0xff]  ;;  %v928_v19 = vld [vmem:[%s1083_s7 + $0x8] sm:$0xff]   ;;  %v930_v23 = vld [vmem:[%s1083_s7 + $0x10] sm:$0xff]   ;;  %s626_s8 = sshll.u32 %s1132_s6, 4  ;;  %s1145_s8 = int_to_ptr.vmem [resolvable:$true] %s626_s8 }
  0x1c   : > { %834 = vmatprep.subr.bf16.mxu0 %v922_v7  ;;  %862 = vmatprep.subr.bf16.mxu1 %v922_v7  ;;  %v929_v20 = vld [vmem:[%s1083_s7 + $0x28] sm:$0xff]   ;;  %v428_v22 = vld [vmem:[%s1096_s24 + $0x40] sm:$0xff]  ;;  %v931_v24 = vld [vmem:[%s1083_s7 + $0x30] sm:$0xff]   ;;  %s934_s17 = scalar_lea.vmem %s1145_s8, 1024  ;;  %p941_p0 = scmp.lt.s32.totalorder %s1145_s8, %s939_s20 }
  0x1d   : > { %438 = vperm.xlu0 %916, %v420_v10   ;;  %453 = vperm.xlu1 %917, %v423_v11   ;;  %v429_v21 = vld [vmem:[%s1096_s24 + $0x48] sm:$0xff]  ;;  %v431_v25 = vld [vmem:[%s1096_s24 + $0x58] sm:$0xff]  ;;  %v430_v26 = vld [vmem:[%s1096_s24 + $0x50] sm:$0xff]  ;;  %p935_p11 = scmp.ne.s32.totalorder %s1145_s8, %s934_s17 }
  0x1e   : > { %v932_v27 = vld [vmem:[%s1083_s7 + $0x18] sm:$0xff]   ;;  %v433_v29 = vld [vmem:[%s1096_s24 + $0x68] sm:$0xff]  ;;  %v432_v30 = vld [vmem:[%s1096_s24 + $0x60] sm:$0xff] }
  0x1f   : > { %835 = vmatpush3.bf16.msra.mxu0 %v922_v7  ;;  %870 = vmatpush3.bf16.msra.mxu1 %v922_v7  ;;  %v933_v28 = vld [vmem:[%s1083_s7 + $0x38] sm:$0xff]   ;;  %v434_v32 = vld [vmem:[%s1096_s24 + $0x70] sm:$0xff]  ;;  %s762_s7 = sshll.u32 %s1043_s16, 10  ;;  %p936_p12 = pnand %p935_p11, %p1060_p5 }
  0x20   : > { %836 = vmatprep.subr.bf16.mxu0 %v923_v8  ;;  %863 = vmatprep.subr.bf16.mxu1 %v923_v8  ;;  %v435_v31 = vld [vmem:[%s1096_s24 + $0x78] sm:$0xff]  ;;  %s1143_s10 = scalar_lea.hbm %s1197_s3, %s762_s7  ;;  %s940_s24 = scalar_lea.vmem %s939_s20, 2048 }
  0x21   : > { %443 = vperm.xlu0 %916, %v421_v12   ;;  %463 = vperm.xlu1 %917, %v425_v14   ;;  %p937_p13 = pneg %p936_p12  ;;  %p942_p1 = scmp.lt.s32.totalorder %s940_s24, %s934_s17 }
  0x23   : > { %837 = vmatpush3.bf16.msra.mxu0 %v923_v8  ;;  %871 = vmatpush3.bf16.msra.mxu1 %v923_v8  ;;  %p943_p2 = por %p942_p1, %p941_p0 }
  0x24   : > { %838 = vmatprep.subr.bf16.mxu0 %v924_v13  ;;  %864 = vmatprep.subr.bf16.mxu1 %v924_v13 }
  0x25   : > { %458 = vperm.xlu0 %916, %v424_v15   ;;  %473 = vperm.xlu1 %917, %v427_v17   ;;  %p944_p3 = pnand %p943_p2, %p937_p13 }
  0x27   : > { %839 = vmatpush3.bf16.msra.mxu0 %v924_v13  ;;  %872 = vmatpush3.bf16.msra.mxu1 %v924_v13 }
  0x28   : > { %840 = vmatprep.subr.bf16.mxu0 %v925_v16  ;;  %865 = vmatprep.subr.bf16.mxu1 %v925_v16 }
  0x29   : > { %468 = vperm.xlu0 %916, %v426_v18   ;;  %483 = vperm.xlu1 %917, %v429_v21  }
  0x2b   : > { %841 = vmatpush3.bf16.msra.mxu0 %v925_v16  ;;  %873 = vmatpush3.bf16.msra.mxu1 %v925_v16 }
  0x2d   : > { %478 = vperm.xlu0 %916, %v428_v22   ;;  %493 = vperm.xlu1 %917, %v431_v25  }
  0x2e   : > { %843 = vmatmul.mubr.bf16.vlgmr.msra.gmra.mrb[0].mxu0 %v928_v19  ;;  %851 = vmatmul.mubr.bf16.vlgmr.msra.gmra.mrb[0].mxu1 %v929_v20 }
  0x2f   : > { %846 = vmatprep.mubr.bf16.mxu0 %v930_v23  ;;  %854 = vmatprep.mubr.bf16.mxu1 %v931_v24 }
  0x31   : > { %488 = vperm.xlu0 %916, %v430_v26   ;;  %503 = vperm.xlu1 %917, %v433_v29  }
  0x35   : > { %498 = vperm.xlu0 %916, %v432_v30   ;;  %513 = vperm.xlu1 %917, %v435_v31  }
  0x36   : > { %847 = vmatmul.mubr.bf16.gmra.mrb[4].mxu0 %v932_v27  ;;  %855 = vmatmul.mubr.bf16.gmra.mrb[4].mxu1 %v933_v28 }
  0x39   : > { %508 = vperm.xlu0 %916, %v434_v32  }
  0x98   : > { %v449_v33 = vpop.permute.xlu1 %448 }
  0x9c   : > { %v439_v34 = vpop.permute.xlu0 %438  ;;  %v454_v35 = vpop.permute.xlu1 %453 }
  0xa0   : > { %v444_v36 = vpop.permute.xlu0 %443  ;;  %v464_v37 = vpop.permute.xlu1 %463 }
  0xa4   : > { %v459_v38 = vpop.permute.xlu0 %458  ;;  %v474_v39 = vpop.permute.xlu1 %473 }
  0xa8   : > { %v469_v40 = vpop.permute.xlu0 %468  ;;  %v484_v41 = vpop.permute.xlu1 %483 }
  0xac   : > { %v479_v42 = vpop.permute.xlu0 %478  ;;  %v494_v43 = vpop.permute.xlu1 %493 }
  0xb0   : > { %v489_v44 = vpop.permute.xlu0 %488  ;;  %v504_v45 = vpop.permute.xlu1 %503 }
  0xb4   : > { %v499_v46 = vpop.permute.xlu0 %498  ;;  %v514_v3 = vpop.permute.xlu1 %513 }
  0xb8   : > { %v509_v4 = vpop.permute.xlu0 %508 }
 0x101   : > { %v844_v47 = vpop.f32.mrb[0].mxu0  ;;  %v852_v48 = vpop.f32.mrb[0].mxu1 }
 0x102   : > { %v357_v49 = vpop.f32.mrb[1].mxu0  ;;  %v389_v50 = vpop.f32.mrb[1].mxu1  ;;  %v518_v53 = vmul.f32 %v844_v47, %v449_v33  ;;  %v526_v54 = vmul.f32 %v852_v48, %v489_v44 }
 0x103   : > { %v845_v51 = vpop.f32.mrb[2].mxu0  ;;  %v853_v52 = vpop.f32.mrb[2].mxu1  ;;  %v516_v59 = vmul.f32 %v439_v34, %v357_v49  ;;  %v524_v60 = vmul.f32 %v479_v42, %v389_v50 }
 0x104   : > { %v519_v55 = vmul.f32 %v845_v51, %v454_v35  ;;  %v527_v56 = vmul.f32 %v853_v52, %v494_v43  ;;  %v360_v57 = vpop.f32.mrb[3].mxu0  ;;  %v392_v58 = vpop.f32.mrb[3].mxu1 }
 0x105   : > { %v517_v61 = vmul.f32 %v444_v36, %v360_v57  ;;  %v525_v62 = vmul.f32 %v484_v41, %v392_v58 }
 0x106   : > { %v771_v63 = vpack.c.bf16 %v519_v55, %v518_v53  ;;  %v791_v0 = vpack.c.bf16 %v527_v56, %v526_v54 }
 0x107   : > { %v766_v1 = vpack.c.bf16 %v517_v61, %v516_v59  ;;  %v786_v2 = vpack.c.bf16 %v525_v62, %v524_v60 }
 0x108   : > { %803 = vst [vmem:[%s1132_s6 + $0x8] sm:$0xff] %v771_v63   ;;  %807 = vst [vmem:[%s1132_s6 + $0x28] sm:$0xff] %v791_v0  }
 0x109   : > { %767 = vst [vmem:[%s1132_s6] sm:$0xff] %v766_v1   ;;  %806 = vst [vmem:[%s1132_s6 + $0x20] sm:$0xff] %v786_v2   ;;  %v848_v5 = vpop.f32.mrb[4].mxu0  ;;  %v856_v6 = vpop.f32.mrb[4].mxu1 }
 0x10a   : > { %v373_v7 = vpop.f32.mrb[5].mxu0  ;;  %v405_v8 = vpop.f32.mrb[5].mxu1  ;;  %v522_v11 = vmul.f32 %v848_v5, %v469_v40  ;;  %v530_v12 = vmul.f32 %v856_v6, %v509_v4 }
 0x10b   : > { %v849_v9 = vpop.f32.mrb[6].mxu0  ;;  %v857_v10 = vpop.f32.mrb[6].mxu1  ;;  %v520_v17 = vmul.f32 %v459_v38, %v373_v7  ;;  %v528_v18 = vmul.f32 %v499_v46, %v405_v8 }
 0x10c   : > { %v523_v13 = vmul.f32 %v849_v9, %v474_v39  ;;  %v531_v14 = vmul.f32 %v857_v10, %v514_v3  ;;  %v376_v15 = vpop.f32.mrb[7].mxu0  ;;  %v408_v16 = vpop.f32.mrb[7].mxu1 }
 0x10d   : > { %v521_v19 = vmul.f32 %v464_v37, %v376_v15  ;;  %v529_v20 = vmul.f32 %v504_v45, %v408_v16 }
 0x10e   : > { %v781_v21 = vpack.c.bf16 %v523_v13, %v522_v11  ;;  %v801_v22 = vpack.c.bf16 %v531_v14, %v530_v12 }
 0x10f   : > { %v776_v23 = vpack.c.bf16 %v521_v19, %v520_v17  ;;  %v796_v24 = vpack.c.bf16 %v529_v20, %v528_v18 }
 0x110   : > { %805 = vst [vmem:[%s1132_s6 + $0x18] sm:$0xff] %v781_v21   ;;  %809 = vst [vmem:[%s1132_s6 + $0x38] sm:$0xff] %v801_v22  }
 0x111   : > { %804 = vst [vmem:[%s1132_s6 + $0x10] sm:$0xff] %v776_v23   ;;  %808 = vst [vmem:[%s1132_s6 + $0x30] sm:$0xff] %v796_v24  }
 0x112   : > { %947 = shalt.err (!%p944_p3)
}
 0x113   : > { %s948_s25 = scalar_lea.hbm %s1143_s10, 1024  ;;  %s952_s28 = scalar_lea.hbm %s1197_s3, 3072 }
 0x114   : > { %p949_p4 = scmp.ne.s32.totalorder %s1143_s10, %s948_s25  ;;  %p953_p9 = scmp.lt.u32.totalorder %s1143_s10, %s1197_s3 }
 0x115   : > { %p954_p10 = scmp.lt.u32.totalorder %s952_s28, %s948_s25  ;;  %p956_p12 = scmp.lt.u32.totalorder %s948_s25, %s1143_s10 }
 0x116   : > { %p950_p7 = pnand %p949_p4, %p1060_p5 }
 0x117   : > { %p955_p11 = por %p954_p10, %p953_p9 }
 0x118   : > { %p951_p8 = pneg %p950_p7 }
 0x119   : > { %p957_p13 = por %p956_p12, %p955_p11 }
 0x11b   : > { %p958_p0 = pnand %p957_p13, %p951_p8 }
 0x11d   : > { %961 = shalt.err (!%p958_p0)
}
 0x11e   : > { %s1000_s4 = smov 64   ;;  %s1001_s5 = smov 4  }
 0x11f   : > { %874 = dma.vmem_to_hbm [thread:$0]  (%p1060_p5), %s1145_s8, 1024, %s1143_s10, %s1153_s11, %s1000_s4, %s1000_s4, %s1001_s5  }
 0x120 PF: > { %p880_p1 = scmp.ge.s32.totalorder %s996_s15, 2  ;;  %s641_s6 = sand.u32 1, %s984_s12  }
 0x121   : > { %s642_s7 = scalar_lea.sflag [#allocation3], %s641_s6 }
 0x122   : > { %p877_p2 = pnand %p880_p1, %p1064_p6 }
 0x124   : > { %979 = dma.done.wait (!%p877_p2), %s642_s7, 1024  }
 0x125   : > { %981 = vsyncadd (!%p877_p2), %s642_s7, 4294966272  ;;  %p13_p3 = scmp.ge.s32.totalorder %s1047_s18, 5   ;;  %s1200_s12 = smov %s988_s13 }
 0x126   : > { %s1201_s13 = smov %s992_s14  ;;  %s1202_s14 = smov %s1058_s21 }
 0x127   : > { %s1203_s15 = smov %s1047_s18  ;;  %15 = sbr.rel (!%p13_p3) target bundleno = 3 (0x3), region = 70 }
 0x12e   :  { %647 = vsyncpa [#allocation3], 1 }
 0x12f   :  { %649 = vsyncpa [#allocation3 + $0x1], 1 }

</bundles_post_ra>
